<compile_context>
chip_gen: v6e
topology: v6e:2x2x1
jax: 0.10.0
libtpu: 0.0.40
codegen_flags: <defaults>
</compile_context>

<pallas_src>
import jax
import jax.numpy as jnp
from jax.experimental import pallas as pl
from jax.experimental.pallas import tpu as pltpu


def _target_attention_kernel(seq_ref, tgt_ref, wt_ref, mask_ref, out_ref):
    in_dtype = seq_ref.dtype

    tgt = tgt_ref[...]                       # (TB, D2), native dtype
    w_t = wt_ref[...]                        # (D2, D1), native dtype

    # v[b, :] = W @ target[b] == target[b] @ W^T  -> (TB, D1), f32 accumulate on MXU.
    v32 = jnp.dot(tgt, w_t, preferred_element_type=jnp.float32)
    v = v32.astype(in_dtype)                 # tiny cast so seq can stay in native dtype

    seq = seq_ref[...]                       # (TB, L, D1), native dtype (no f32 upcast)

    # score[b, l] = <seq[b, l, :], v[b, :]>  -> (TB, L)
    # Batched MXU contraction (same 'bqd,bkd->bqk' pattern as flash attention, q = 1).
    score = jnp.einsum("bqd,bkd->bqk", v[:, None, :], seq,
                       preferred_element_type=jnp.float32)[:, 0, :]      # (TB, L)

    # masked_fill(mask, -1e16); mask is int8, nonzero == masked.
    m = mask_ref[...].astype(jnp.int32)      # tiny unpack; keeps the select in 32-bit layout
    score = jnp.where(m != 0, jnp.float32(-1e16), score)

    # Numerically stable softmax over L (lane axis).  Fully-masked rows are safe:
    # after subtracting the row max, e == 1 everywhere so denom >= 1 (no NaN path).
    s_max = jnp.max(score, axis=-1, keepdims=True)    # (TB, 1)
    e = jnp.exp(score - s_max)                        # (TB, L) f32
    denom = jnp.sum(e, axis=-1, keepdims=True)        # (TB, 1)

    # out[b, :] = (sum_l e[b, l] * seq[b, l, :]) / denom[b]  -> (TB, D1)
    p = e.astype(in_dtype)                            # tiny cast; f32 accumulate below
    out_unnorm = jnp.einsum("bqk,bkd->bqd", p[:, None, :], seq,
                            preferred_element_type=jnp.float32)[:, 0, :]  # (TB, D1)

    inv = pl.reciprocal(denom, approx=True)           # EUP slot instead of a long divide
    out_ref[...] = (out_unnorm * inv).astype(out_ref.dtype)


def _round_up(x, m):
    return ((x + m - 1) // m) * m


def _row_bytes(lanes, itemsize):
    # One sublane row, lane dim padded to 128.
    return _round_up(lanes, 128) * itemsize


def _plane_bytes(sublanes, lanes, itemsize):
    # A 2-D (sublane, lane) plane in native VMEM layout: lane dim padded to 128,
    # sublane dim padded to the dtype packing granule (f32: 8, bf16: 16, i8: 32).
    sub_granule = max(8, 32 // max(1, itemsize))
    return _round_up(sublanes, sub_granule) * _round_up(lanes, 128) * itemsize


def _pick_tiling(B, L, D1, D2, in_itemsize, out_itemsize):
    """Choose the batch-tile TB and the scoped-VMEM limit for this chip."""
    try:
        vmem_capacity = int(pltpu.get_tpu_info().vmem_capacity_bytes)
    except Exception:
        vmem_capacity = 64 * 1024 * 1024          # conservative (v7x-sized) fallback
    # Leave headroom for Mosaic-internal scratch; generation-aware by construction
    # since v7x reports a smaller per-TensorCore capacity than v5e/v6e.
    vmem_limit = int(0.7 * vmem_capacity)

    # Per-batch working set: double-buffered pipeline operands + f32 temporaries,
    # with lane/sublane padding so small D1/L don't silently inflate the footprint.
    per_batch = (
        2 * _plane_bytes(L, D1, in_itemsize)       # seq tile, double buffered
        + 2 * _row_bytes(D2, in_itemsize)          # target
        + 2 * _row_bytes(L, 1)                     # int8 mask
        + 2 * _row_bytes(D1, out_itemsize)         # output
        + 4 * _row_bytes(L, 4)                     # score / e temporaries (f32)
        + 4 * _row_bytes(D1, 4)                    # v / out accumulator temps (f32)
    )
    fixed = 2 * _plane_bytes(D2, D1, in_itemsize) + (2 << 20)   # W^T + slack

    tb = max(1, (vmem_limit - fixed) // per_batch)

    if tb >= B:
        tb = B                                     # whole batch in a single grid step
    else:
        # Keep >= 2 grid steps for large batches so both v7x TensorCores get work
        # (one extra ~0.35us step is harmless on single-TC v5e/v6e).
        if B >= 64:
            tb = min(tb, _round_up(pl.cdiv(B, 2), 32))
        # Bound per-step batched-contraction size / code size; tiles this large are
        # already deep into the >85%-of-HBM-roofline regime.
        tb = min(tb, 512)
        # Multiple of 32 keeps the second-to-last block dim legal for every operand
        # dtype (f32 / bf16 / int8).
        tb = max(32, (tb // 32) * 32)
        tb = min(tb, B)
    return int(tb), int(vmem_limit)


def target_attention(seq_emb, W, target, mask):
    """seq_emb: (B, L, D1), W: (1, D1, D2), target: (B, D2), mask: (B, L) bool.
    Returns (B, D1) in seq_emb's dtype (== PyTorch Target_Attention.forward)."""
    B, L, D1 = seq_emb.shape
    D2 = W.shape[-1]
    assert W.shape == (1, D1, D2)
    assert target.shape == (B, D2)
    assert mask.shape == (B, L)

    # Re-association: (seq @ W) @ target == seq @ (W @ target); only W^T is needed.
    w_t = jnp.swapaxes(W[0], 0, 1).astype(seq_emb.dtype)     # (D2, D1), tiny
    mask_i8 = mask.astype(jnp.int8)                          # 1 byte/elem mask stream

    in_isz = jnp.dtype(seq_emb.dtype).itemsize
    tb, vmem_limit = _pick_tiling(B, L, D1, D2, in_isz, in_isz)
    grid = (pl.cdiv(B, tb),)

    # NOTE: when B % tb != 0 the trailing partial block computes on padded/stale VMEM
    # rows; those rows are dropped on writeback, so any inf/NaN they produce is
    # harmless by construction.
    # TODO(synk): if production D1 < 128 and L >= 128, a (B, D1, L) layout (lane axis
    # = L) would cut the padded VMEM footprint of the seq tile; not done here because
    # the wrapper-side transpose would cost a full extra HBM pass over seq_emb.
    out = pl.pallas_call(
        _target_attention_kernel,
        out_shape=jax.ShapeDtypeStruct((B, D1), seq_emb.dtype),
        grid_spec=pltpu.PrefetchScalarGridSpec(
            num_scalar_prefetch=0,
            grid=grid,
            in_specs=[
                pl.BlockSpec((tb, L, D1), lambda b: (b, 0, 0)),   # seq tile (streamed)
                pl.BlockSpec((tb, D2), lambda b: (b, 0)),         # target tile
                pl.BlockSpec((D2, D1), lambda b: (0, 0)),         # W^T (shared)
                pl.BlockSpec((tb, L), lambda b: (b, 0)),          # mask tile (int8)
            ],
            out_specs=pl.BlockSpec((tb, D1), lambda b: (b, 0)),
        ),
        compiler_params=pltpu.CompilerParams(
            dimension_semantics=("parallel",),
            vmem_limit_bytes=vmem_limit,
        ),
    )(seq_emb, target, w_t, mask_i8)
    return out


def _reference(seq_emb, W, target, mask):
    # Pure-JAX reference mirroring the PyTorch forward.
    score = jnp.einsum("bld,de->ble", seq_emb, W[0])                  # (B, L, D2)
    score = jnp.einsum("ble,be->bl", score, target)[..., None]        # (B, L, 1)
    score = jnp.where(mask[..., None], jnp.float32(-1e16), score)     # (B, L, 1)
    weight = jax.nn.softmax(jnp.swapaxes(score, -2, -1), axis=-1)     # (B, 1, L)
    return jnp.einsum("bql,bld->bqd", weight, seq_emb)[:, 0, :]       # (B, D1)


if __name__ == "__main__":
    B, L, D1, D2 = 2, 8, 32, 32

    key = jax.random.PRNGKey(0)
    k_w, k_seq, k_tgt, k_mask = jax.random.split(key, 4)

    # Parameter init: xavier_normal_ on tensor of shape (1, D1, D2):
    # fan_in = D1 * D2, fan_out = 1 * D2, std = sqrt(2 / (fan_in + fan_out)).
    fan_in, fan_out = D1 * D2, 1 * D2
    std = (2.0 / (fan_in + fan_out)) ** 0.5
    W = std * jax.random.normal(k_w, (1, D1, D2), dtype=jnp.float32)

    seq_emb = jax.random.normal(k_seq, (B, L, D1), dtype=jnp.float32)
    target = jax.random.normal(k_tgt, (B, D2), dtype=jnp.float32)
    # mask: True means "masked out"; keep at least one valid position per row.
    mask = jax.random.bernoulli(k_mask, p=0.3, shape=(B, L))
    mask = mask.at[:, 0].set(False)

    out = jax.block_until_ready(target_attention(seq_emb, W, target, mask))
    ref = _reference(seq_emb, W, target, mask)

    assert out.shape == (B, D1)
    # approx reciprocal (EUP) bounds the match at ~1e-4 relative; everything else
    # is exact f32 math.
    assert jnp.allclose(out, ref, rtol=2e-3, atol=2e-3), "mismatch vs reference"

    print("KERNEL_OK")
</pallas_src>

<mosaic_0001>
module attributes {stable_mosaic.version = 11 : i64} {
  func.func @_target_attention_kernel(%arg0: i32, %arg1: memref<2x8x32xf32, #tpu.memory_space<vmem>>, %arg2: memref<2x32xf32, #tpu.memory_space<vmem>>, %arg3: memref<32x32xf32, #tpu.memory_space<vmem>>, %arg4: memref<2x8xi8, #tpu.memory_space<vmem>>, %arg5: memref<2x32xf32, #tpu.memory_space<vmem>>) attributes {dimension_semantics = [#tpu.dimension_semantics<parallel>], iteration_bounds = array<i64: 1>, scalar_prefetch = 0 : i64, scratch_operands = 0 : i64, tpu.core_type = #tpu.core_type<tc>, window_params = [{transform_indices = @transform_0, window_bounds = array<i64: 2, 8, 32>}, {transform_indices = @transform_1, window_bounds = array<i64: 2, 32>}, {pipeline_mode = #tpu.pipeline_mode<synchronous>, transform_indices = @transform_2, window_bounds = array<i64: 32, 32>}, {transform_indices = @transform_3, window_bounds = array<i64: 2, 8>}, {transform_indices = @transform_4, window_bounds = array<i64: 2, 32>}]} {
    %c0 = arith.constant 0 : index
    %c0_0 = arith.constant 0 : index
    %0 = vector.load %arg2[%c0, %c0_0] : memref<2x32xf32, #tpu.memory_space<vmem>>, vector<2x32xf32>
    %c0_1 = arith.constant 0 : index
    %c0_2 = arith.constant 0 : index
    %1 = vector.load %arg3[%c0_1, %c0_2] : memref<32x32xf32, #tpu.memory_space<vmem>>, vector<32x32xf32>
    %cst = arith.constant dense<0.000000e+00> : vector<2x32xf32>
    %2 = tpu.matmul %0, %1, %cst {dimension_numbers = #tpu.dot_dimension_numbers<[1], [0], [0], [1], [0, 0, 1, 1], [], []>} : vector<2x32xf32>, vector<32x32xf32>, vector<2x32xf32> -> vector<2x32xf32>
    %c0_3 = arith.constant 0 : index
    %c0_4 = arith.constant 0 : index
    %c0_5 = arith.constant 0 : index
    %3 = vector.load %arg1[%c0_3, %c0_4, %c0_5] : memref<2x8x32xf32, #tpu.memory_space<vmem>>, vector<2x8x32xf32>
    %4 = vector.shape_cast %2 : vector<2x32xf32> to vector<2x1x32xf32>
    "tpu.trace_start"() <{level = 10 : i32, message = "bqd,bkd->bqk"}> : () -> ()
    %cst_6 = arith.constant dense<0.000000e+00> : vector<2x1x8xf32>
    %5 = tpu.matmul %4, %3, %cst_6 {dimension_numbers = #tpu.dot_dimension_numbers<[2], [2], [1], [1], [0, 0, 0, 1, 1, 1], [0], [0]>} : vector<2x1x32xf32>, vector<2x8x32xf32>, vector<2x1x8xf32> -> vector<2x1x8xf32>
    "tpu.trace_stop"() : () -> ()
    %6 = vector.shape_cast %5 : vector<2x1x8xf32> to vector<2x8xf32>
    %c0_7 = arith.constant 0 : index
    %c0_8 = arith.constant 0 : index
    %7 = vector.load %arg4[%c0_7, %c0_8] : memref<2x8xi8, #tpu.memory_space<vmem>>, vector<2x8xi8>
    %8 = arith.extsi %7 : vector<2x8xi8> to vector<2x8xi32>
    %c0_i32 = arith.constant 0 : i32
    %9 = vector.broadcast %c0_i32 : i32 to vector<2x8xi32>
    %10 = arith.cmpi ne, %8, %9 : vector<2x8xi32>
    %cst_9 = arith.constant -1.000000e+16 : f32
    %11 = vector.broadcast %cst_9 : f32 to vector<2x8xf32>
    %12 = arith.select %10, %11, %6 : vector<2x8xi1>, vector<2x8xf32>
    %cst_10 = arith.constant dense<0xFF800000> : vector<2xf32>
    %13 = vector.multi_reduction <maximumf>, %12, %cst_10 [1] : vector<2x8xf32> to vector<2xf32>
    %14 = vector.shape_cast %13 : vector<2xf32> to vector<2x1xf32>
    %15 = vector.broadcast %14 : vector<2x1xf32> to vector<2x8xf32>
    %16 = arith.subf %12, %15 : vector<2x8xf32>
    %17 = math.exp %16 : vector<2x8xf32>
    %cst_11 = arith.constant dense<0.000000e+00> : vector<2xf32>
    %18 = vector.multi_reduction <add>, %17, %cst_11 [1] : vector<2x8xf32> to vector<2xf32>
    %19 = vector.shape_cast %18 : vector<2xf32> to vector<2x1xf32>
    %20 = vector.shape_cast %17 : vector<2x8xf32> to vector<2x1x8xf32>
    "tpu.trace_start"() <{level = 10 : i32, message = "bqk,bkd->bqd"}> : () -> ()
    %cst_12 = arith.constant dense<0.000000e+00> : vector<2x1x32xf32>
    %21 = tpu.matmul %20, %3, %cst_12 {dimension_numbers = #tpu.dot_dimension_numbers<[2], [1], [1], [2], [0, 0, 0, 1, 1, 2], [0], [0]>} : vector<2x1x8xf32>, vector<2x8x32xf32>, vector<2x1x32xf32> -> vector<2x1x32xf32>
    "tpu.trace_stop"() : () -> ()
    %22 = vector.shape_cast %21 : vector<2x1x32xf32> to vector<2x32xf32>
    %23 = tpu.reciprocal %19 {approx = true} : vector<2x1xf32> -> vector<2x1xf32>
    %24 = vector.broadcast %23 : vector<2x1xf32> to vector<2x32xf32>
    %25 = arith.mulf %22, %24 : vector<2x32xf32>
    %c0_13 = arith.constant 0 : index
    %c0_14 = arith.constant 0 : index
    %26 = vector.load %arg5[%c0_13, %c0_14] : memref<2x32xf32, #tpu.memory_space<vmem>>, vector<2x32xf32>
    tpu.vector_store %arg5[%c0_13, %c0_14], %25 {strides = array<i32>} : memref<2x32xf32, #tpu.memory_space<vmem>>, vector<2x32xf32>,
    return
  }
  func.func @transform_0(%arg0: i32) -> (i32, i32, i32) {
    %c0_i32 = arith.constant 0 : i32
    %c0_i32_0 = arith.constant 0 : i32
    %c0_i32_1 = arith.constant 0 : i32
    return %arg0, %c0_i32, %c0_i32_0 : i32, i32, i32
  }
  func.func @transform_1(%arg0: i32) -> (i32, i32) {
    %c0_i32 = arith.constant 0 : i32
    %c0_i32_0 = arith.constant 0 : i32
    return %arg0, %c0_i32 : i32, i32
  }
  func.func @transform_2(%arg0: i32) -> (i32, i32) {
    %c0_i32 = arith.constant 0 : i32
    %c0_i32_0 = arith.constant 0 : i32
    %c0_i32_1 = arith.constant 0 : i32
    return %c0_i32, %c0_i32_0 : i32, i32
  }
  func.func @transform_3(%arg0: i32) -> (i32, i32) {
    %c0_i32 = arith.constant 0 : i32
    %c0_i32_0 = arith.constant 0 : i32
    return %arg0, %c0_i32 : i32, i32
  }
  func.func @transform_4(%arg0: i32) -> (i32, i32) {
    %c0_i32 = arith.constant 0 : i32
    %c0_i32_0 = arith.constant 0 : i32
    return %arg0, %c0_i32 : i32, i32
  }
}

</mosaic_0001>

<bundles_post_ra>
// kernel: tpu_custom_call.1
= control target key start
LH: loop header
LB: loop body
LE: loop exit
PB: predicated region body
PF: predicated region fallthrough
CT: control target
= control target key end

     0   :  { %9 = vsyncpa [#allocation3], 0  ;;  %s742_s0 = inlined_call_operand.hbm [shape: f32[2,8,32], index: 0, kind: input, shape index: {}]   ;;  %s743_s1 = inlined_call_operand.hbm [shape: f32[2,32], index: 1, kind: input, shape index: {}]   ;;  %s744_s2 = inlined_call_operand.hbm [shape: f32[32,32], index: 2, kind: input, shape index: {}]   ;;  %s745_s3 = inlined_call_operand.vmem [shape: s8[2,8], index: 3, kind: input, shape index: {}]   ;;  %s746_s4 = inlined_call_operand.hbm [shape: f32[2,32], index: 4, kind: output, shape index: {}]  }
   0x1   :  { %10 = vsyncpa [#allocation6], 0 }
   0x2   :  { %11 = vsyncpa [#allocation4], 0  ;;  %s681_s15 = smov [#allocation5]   ;;  %s682_s17 = smov [#allocation2]  }
   0x3   :  { %s30_s16 = sshll.u32 %s681_s15, 4  ;;  %s17_s18 = sshll.u32 %s682_s17, 4  ;;  %s31_s16 = int_to_ptr.vmem [resolvable:$true] %s30_s16  ;;  %s18_s18 = int_to_ptr.vmem [resolvable:$true] %s17_s18 }
   0x4   :  { %s603_s19 = scalar_lea.vmem %s31_s16, 32  ;;  %p608_p1 = scmp.lt.s32.totalorder %s31_s16, %s31_s16 }
   0x5   :  { %p604_p0 = scmp.ne.s32.totalorder %s31_s16, %s603_s19  ;;  %p609_p2 = scmp.lt.s32.totalorder %s603_s19, %s603_s19 }
   0x7   :  { %p610_p3 = por %p609_p2, %p608_p1 }
   0x9   :  { %p611_p4 = pnand %p610_p3, %p604_p0 }
   0xb   :  { %614 = shalt.err (!%p611_p4)
}
   0xc   :  { %33 = dma.hbm_to_vmem [thread:$0]  %s743_s1, 32, %s31_s16, [#allocation6]  }
   0xd   :  { %s623_s22 = scalar_lea.vmem %s18_s18, 256  ;;  %p628_p6 = scmp.lt.s32.totalorder %s18_s18, %s18_s18 }
   0xe   :  { %p624_p5 = scmp.ne.s32.totalorder %s18_s18, %s623_s22  ;;  %p629_p7 = scmp.lt.s32.totalorder %s623_s22, %s623_s22 }
  0x10   :  { %p630_p8 = por %p629_p7, %p628_p6 }
  0x12   :  { %p631_p9 = pnand %p630_p8, %p624_p5 }
  0x14   :  { %634 = shalt.err (!%p631_p9)
}
  0x15   :  { %s683_s23 = smov 128   ;;  %s684_s24 = smov 8  }
  0x16   :  { %23 = dma.hbm_to_vmem [thread:$0]  %s742_s0, 256, %s18_s18, [#allocation3], %s683_s23, %s683_s23, %s684_s24  }
  0x17   :  { %s685_s27 = smov [#allocation7]  }
  0x18   :  { %s39_s28 = sshll.u32 %s685_s27, 4  ;;  %s40_s28 = int_to_ptr.vmem [resolvable:$true] %s39_s28 }
  0x19   :  { %s643_s29 = scalar_lea.vmem %s40_s28, 512  ;;  %p648_p11 = scmp.lt.s32.totalorder %s40_s28, %s40_s28 }
  0x1a   :  { %p644_p10 = scmp.ne.s32.totalorder %s40_s28, %s643_s29  ;;  %p649_p12 = scmp.lt.s32.totalorder %s643_s29, %s643_s29 }
  0x1c   :  { %p650_p13 = por %p649_p12, %p648_p11 }
  0x1e   :  { %p651_p0 = pnand %p650_p13, %p644_p10 }
  0x20   :  { %654 = shalt.err (!%p651_p0)
}
  0x21   :  { %45 = dma.hbm_to_vmem [thread:$0]  %s744_s2, 512, %s40_s28, [#allocation6], %s683_s23, %s683_s23, %s684_s24  }
  0x22   :  { %675 = dma.done.wait [#allocation3], 256  }
  0x23   :  { %676 = vsyncadd [#allocation3], 4294967040 }
  0x24   :  { %677 = dma.done.wait [#allocation6], 544  }
  0x25   :  { %678 = vsyncadd [#allocation6], 4294966752  ;;  %v686_v0 = vmov 0.0   ;;  %vm687_vm0 = vmmov 0   ;;  %v61_v1 = vld [vmem:[#allocation7 + $0x18] sm:$0xff]  ;;  %v60_v2 = vld [vmem:[#allocation7 + $0x10] sm:$0xff]  ;;  %v142_v9 = vlaneseq }
  0x26   :  { %551 = vmatprep.subr.mxu0 %v686_v0  ;;  %559 = vmatprep.mubr.msk.f32.mxu0 %vm687_vm0, %v686_v0  ;;  %v59_v3 = vld [vmem:[#allocation7 + $0x8] sm:$0xff]  ;;  %v58_v4 = vld [vmem:[#allocation7] sm:$0xff]  ;;  %v57_v5 = vld [vmem:[#allocation5] sm:$0x3]  ;;  %vm62_vm1 = vcmask 261120   ;;  %vm317_vm2 = vcmask 1041409  }
  0x27   :  { %562 = vmatprep.subr.mxu1 %v686_v0  ;;  %564 = vmatprep.mubr.msk.f32.mxu1 %vm687_vm0, %v686_v0  ;;  %v136_v6 = vld [vmem:[#allocation2] sm:$0xff]  ;;  %v688_v7 = vmov 1966171168   ;;  %v143_v11 = vshrl.u32 %v142_v9, 7  ;;  %v137_v18 = vld [vmem:[#allocation2 + $0x8] sm:$0xff]  ;;  %vm319_vm3 = vcmask 1045509  }
  0x28   :  { %552 = vmatpush3.msra.mxu0 %v61_v1  ;;  %563 = vmatpush3.xpose.msk.msra.mxu1 %vm62_vm1, %v136_v6  ;;  %v140_v8 = vunpack.c.l.s4 %v688_v7  ;;  %v311_v20 = vld [vmem:[%s745_s3] sm:$0x1]  ;;  %vm323_vm5 = vcmask 58368   ;;  %vm356_vm6 = vcmask 64512   ;;  %s689_s3 = smov [#allocation8]   ;;  %vm513_vm7 = vcmask 254976  }
  0x29   :  { %553 = vmatprep.subr.mxu0 %v686_v0  ;;  %567 = vmatprep.subr.mxu1 %v686_v0  ;;  %v312_v23 = vunpack.c.0.s8 %v311_v20  ;;  %s521_s5 = sshll.u32 %s689_s3, 4  ;;  %s522_s5 = int_to_ptr.vmem [resolvable:$true] %s521_s5 }
  0x2a   :  { %554 = vmatpush3.msra.mxu0 %v60_v2  ;;  %v141_v10 = vunpack.c.0.s8 %v140_v8  ;;  %s655_s6 = scalar_lea.vmem %s522_s5, 32  ;;  %p660_p2 = scmp.lt.s32.totalorder %s522_s5, %s522_s5 }
  0x2b   :  { %555 = vmatprep.subr.mxu0 %v686_v0  ;;  %vm313_vm4 = vcmp.ne.s32.totalorder %v312_v23, 0  ;;  %p656_p1 = scmp.ne.s32.totalorder %s522_s5, %s655_s6  ;;  %p661_p3 = scmp.lt.s32.totalorder %s655_s6, %s655_s6 }
  0x2c   :  { %556 = vmatpush3.msra.mxu0 %v59_v3  ;;  %v144_v12 = vsub.s32 %v141_v10, %v143_v11 }
  0x2d   :  { %557 = vmatprep.subr.mxu0 %v686_v0  ;;  %p662_p4 = por %p661_p3, %p660_p2 }
  0x2e   :  { %558 = vmatpush3.msra.mxu0 %v58_v4 }
  0x2f   :  { %560 = vmatmul.mubr.msk.f32.vlgmr.msra.gmra.mxu0 %vm62_vm1, %v57_v5  ;;  %572 = vmatprep.subr.mxu0 %v686_v0  ;;  %p663_p5 = pnand %p662_p4, %p656_p1 }
  0x30   :  { %574 = vmatprep.mubr.msk.f32.mxu0 %vm687_vm0, %v686_v0  ;;  %573 = vmatpush3.msra.mxu0 %v136_v6 }
  0xef   :  { %v132_v13 = vpop.f32.mrf.mxu0 }
  0xf0   :  { %v145_v14 = vrot.slane %v132_v13, %v144_v12 }
  0xf1   :  { %v561_v15 = vpop.f32.mrf.mxu0 }
  0xf2   :  { %v146_v16 = vcombine.high %v145_v14, %v145_v14  ;;  %v153_v17 = vrot.slane %v145_v14, %v144_v12 }
  0xf4   :  { %565 = vmatmul.mubr.msk.f32.vlgmr.msra.gmra.mxu1 %vm62_vm1, %v153_v17  ;;  %v160_v19 = vrot.slane %v146_v16, %v144_v12 }
  0xf5   :  { %568 = vmatpush3.xpose.msk.msra.mxu1 %vm62_vm1, %v137_v18  ;;  %569 = vmatprep.mubr.msk.f32.mxu1 %vm687_vm0, %v686_v0 }
  0xf6   :  { %577 = vmatprep.subr.mxu1 %v686_v0 }
  0xf8   :  { %570 = vmatmul.mubr.msk.f32.vlgmr.msra.gmra.mxu1 %vm62_vm1, %v160_v19 }
  0xf9   :  { %578 = vmatpush3.msra.mxu1 %v137_v18  ;;  %579 = vmatprep.mubr.msk.f32.mxu1 %vm687_vm0, %v686_v0 }
 0x1b4   :  { %v232_v21 = vpop.f32.mrf.mxu1 }
 0x1b6   :  { %v566_v22 = vpop.f32.mrf.mxu1 }
 0x1b8   :  { %v307_v24 = vpop.f32.mrf.mxu1 }
 0x1b9   :  { %v316_v25 = vrot.slane %v307_v24, 7 }
 0x1ba   :  { %v571_v26 = vpop.f32.mrf.mxu1 }
 0x1bb   :  { %v318_v27 = vsel %vm317_vm2, %v316_v25, %v232_v21 }
 0x1bc   :  { %v320_v28 = vsel %vm319_vm3, %v316_v25, %v318_v27 }
 0x1bd   :  { %v322_v29 = vsel %vm313_vm4, -1e+16, %v320_v28 }
 0x1be   :  { %v324_v30 = vsel %vm323_vm5, %v322_v29, -inf }
 0x1bf   :  { %325 = vmax.xlane.f32.xlu0 %v324_v30 }
 0x248   :  { %v326_v31 = vpop.xlane.xlu0 %325 }
 0x249   :  { %v327_v32 = vsub.f32 %v322_v29, %v326_v31 }
 0x24b   :  { %v328_v33 = vmul.f32 1.442695, %v327_v32 }
 0x24d   :  { %591 = vpow2.f32 %v328_v33 }
 0x25a   :  { %v592_v34 = vpop.eup %591 }
 0x25b   :  { %v330_v35 = vsel %vm323_vm5, %v592_v34, 0.0  ;;  %v340_v36 = vrot.slane %v592_v34, %v144_v12 }
 0x25c   :  { %331 = vadd.xlane.f32.xlu0 %v330_v35 }
 0x25d   :  { %v348_v37 = vrot.slane %v340_v36, %v144_v12  ;;  %v341_v38 = vcombine.high %v340_v36, %v340_v36 }
 0x25f   :  { %575 = vmatmul.mubr.msk.f32.vlgmr.msra.gmra.mxu0 %vm356_vm6, %v348_v37  ;;  %v355_v39 = vrot.slane %v341_v38, %v144_v12 }
 0x261   :  { %580 = vmatmul.mubr.msk.f32.vlgmr.msra.gmra.mxu1 %vm356_vm6, %v355_v39 }
 0x2e5   :  { %v332_v40 = vpop.xlane.xlu0 %331 }
 0x2e6   :  { %593 = vrcp.f32 %v332_v40 }
 0x2f3   :  { %v594_v41 = vpop.eup %593 }
 0x2f4   :  { %v503_v43 = vrot.slane %v594_v41, 1 }
 0x31f   :  { %v425_v42 = vpop.f32.mrf.mxu0 }
 0x320   :  { %v506_v48 = vmul.f32 %v594_v41, %v425_v42 }
 0x321   :  { %v576_v44 = vpop.f32.mrf.mxu0  ;;  %v497_v45 = vpop.f32.mrf.mxu1 }
 0x322   :  { %v507_v46 = vmul.f32 %v503_v43, %v497_v45 }
 0x323   :  { %v581_v47 = vpop.f32.mrf.mxu1 }
 0x324   :  { %v510_v49 = vrot.slane %v507_v46, 7 }
 0x326   :  { %v511_v50 = vsel %vm317_vm2, %v510_v49, %v506_v48 }
 0x327   :  { %514 = vst.msk [vmem:[#allocation8] sm:$0x3] %vm513_vm7, %v511_v50 }
 0x328   :  { %666 = shalt.err (!%p663_p5)
}
 0x329   :  { %524 = dma.vmem_to_hbm [thread:$0]  %s522_s5, 32, %s746_s4, [#allocation4]  }
 0x32a   :  { %679 = dma.done.wait [#allocation4], 32  }
 0x32b   :  { %680 = vsyncadd [#allocation4], 4294967264 }
 0x32c   :  { %528 = vsyncpa [#allocation3], 1 }
 0x32d   :  { %529 = vsyncpa [#allocation6], 1 }
 0x32e   :  { %530 = vsyncpa [#allocation4], 1 }

</bundles_post_ra>
